<compile_context>
chip_gen: v6e
topology: v6e:2x2x1
jax: 0.10.0
libtpu: 0.0.40
codegen_flags: <defaults>
</compile_context>

<pallas_src>
import functools

import jax
import jax.numpy as jnp
from jax.experimental import pallas as pl
from jax.experimental.pallas import tpu as pltpu


_TARGET_BLOCK_BYTES = 4 * 1024 * 1024   # ~4 MiB output block (amortizes per-step overhead)
_VMEM_LIMIT_BYTES = 32 * 1024 * 1024    # safe on v5e/v6e/v7x; raises v5e's 16 MiB default


# ---------------------------------------------------------------------------
# Kernels
# ---------------------------------------------------------------------------

def _encoder_kernel_flat(x_ref, w_ref, b_ref, o_ref, *, groups, length):
    """Flattened-output path (L % 128 == 0).

    x_ref: (tn, L)            batch rows of the single input channel
    w_ref: (1, 1, groups)     f32 conv weights for this channel group
    b_ref: (1, 1, groups)     f32 conv bias for this channel group
    o_ref: (tn, groups * L)   lane-dense flattened (channel, length) slab
    """
    x = x_ref[...].astype(jnp.float32)     # load once, f32 compute
    w = w_ref[...]                         # (1, 1, groups), f32
    b = b_ref[...]
    for k in range(groups):                # static, fully unrolled (groups <= latent)
        wk = w[:, :, k]                    # (1, 1) -> broadcast over (tn, L)
        bk = b[:, :, k]
        y = jnp.tanh(x * wk + bk)          # VPU mul/add + EUP tanh, f32
        # static, 128-aligned lane slice of the wide output block
        o_ref[:, k * length:(k + 1) * length] = y.astype(o_ref.dtype)


def _encoder_kernel_3d(x_ref, w_ref, b_ref, o_ref):
    """General 3-D path (any L, optionally L-tiled).

    x_ref: (tn, tl); w_ref/b_ref: (1, latent, 1) f32; o_ref: (tn, latent, tl)
    """
    x = x_ref[...].astype(jnp.float32)                    # (tn, tl), f32
    y = x[:, None, :] * w_ref[...] + b_ref[...]           # (tn, latent, tl)
    o_ref[...] = jnp.tanh(y).astype(o_ref.dtype)


# ---------------------------------------------------------------------------
# Wrapper
# ---------------------------------------------------------------------------

def _divisors(n):
    return [d for d in range(1, n + 1) if n % d == 0]


def encoder_forward(z, weight, bias):
    """tanh(Conv1d(1 -> latent, kernel_size=1)(z)).

    z: (N, 1, L); weight: (latent, 1, 1); bias: (latent,).
    Returns (N, latent, L), matching the PyTorch forward.
    """
    N, C, L = z.shape
    assert C == 1, "Encoder expects a single input channel"
    latent = weight.shape[0]
    dtype = z.dtype
    out_item = jnp.dtype(dtype).itemsize
    size_item = max(out_item, 4)           # size for f32 compute intermediates

    x2d = z.reshape(N, L)
    w1d = weight.reshape(latent).astype(jnp.float32)   # keep params in f32
    b1d = bias.reshape(latent).astype(jnp.float32)

    cost = pl.CostEstimate(
        flops=2 * N * latent * L,
        transcendentals=N * latent * L,
        bytes_accessed=out_item * N * L + 8 * latent + out_item * N * latent * L,
    )
    cparams = pltpu.CompilerParams(
        dimension_semantics=("parallel", "parallel"),
        vmem_limit_bytes=_VMEM_LIMIT_BYTES,
    )

    tn0 = N if N < 8 else 8
    use_flat = (L % 128 == 0) and (tn0 * L * size_item <= _TARGET_BLOCK_BYTES)

    if use_flat:
        # ------------- Path A: flattened (N, latent*L) output -------------
        divs = _divisors(latent)
        fitting = [g for g in divs
                   if tn0 * g * L * size_item <= _TARGET_BLOCK_BYTES]
        g = fitting[-1] if fitting else 1          # widest fitting channel group

        # grow the batch tile (multiples of 8, never past N -> no oversized blocks)
        tn = tn0
        while tn + 8 <= N and (tn + 8) * g * L * size_item <= _TARGET_BLOCK_BYTES:
            tn += 8

        n_tiles = pl.cdiv(N, tn)
        m_tiles = latent // g
        # keep >= 2 grid steps so both v7x TensorCores get work (free elsewhere)
        if n_tiles * m_tiles < 2:
            proper = [d for d in divs if d < g and (latent // d) >= 2]
            if proper:
                g = proper[-1]
                m_tiles = latent // g

        M = latent * L
        w3 = w1d.reshape(latent // g, 1, g)
        b3 = b1d.reshape(latent // g, 1, g)
        kern = functools.partial(_encoder_kernel_flat, groups=g, length=L)

        out2d = pl.pallas_call(
            kern,
            out_shape=jax.ShapeDtypeStruct((N, M), dtype),
            grid_spec=pltpu.PrefetchScalarGridSpec(
                num_scalar_prefetch=0,
                grid=(n_tiles, m_tiles),
                in_specs=[
                    pl.BlockSpec((tn, L), lambda i, j: (i, 0)),       # x: resident per row-tile
                    pl.BlockSpec((1, 1, g), lambda i, j: (j, 0, 0)),  # w group
                    pl.BlockSpec((1, 1, g), lambda i, j: (j, 0, 0)),  # b group
                ],
                out_specs=pl.BlockSpec((tn, g * L), lambda i, j: (i, j)),
            ),
            compiler_params=cparams,
            cost_estimate=cost,
        )(x2d, w3, b3)
        # (N, latent*L) row-major == (N, latent, L) row-major -> free reshape
        return out2d.reshape(N, latent, L)

    # ------------- Path B: general 3-D output, optional L tiling -------------
    if tn0 * latent * L * size_item <= _TARGET_BLOCK_BYTES:
        tl = L
    else:
        tl = max(128, (_TARGET_BLOCK_BYTES // (tn0 * latent * size_item)) // 128 * 128)

    tn = tn0
    if tl == L:
        while tn + 8 <= N and (tn + 8) * latent * tl * size_item <= _TARGET_BLOCK_BYTES:
            tn += 8

    n_tiles = pl.cdiv(N, tn)
    l_tiles = pl.cdiv(L, tl)
    w3 = w1d.reshape(1, latent, 1)
    b3 = b1d.reshape(1, latent, 1)

    return pl.pallas_call(
        _encoder_kernel_3d,
        out_shape=jax.ShapeDtypeStruct((N, latent, L), dtype),
        grid_spec=pltpu.PrefetchScalarGridSpec(
            num_scalar_prefetch=0,
            grid=(n_tiles, l_tiles),
            in_specs=[
                pl.BlockSpec((tn, tl), lambda i, j: (i, j)),
                pl.BlockSpec((1, latent, 1), lambda i, j: (0, 0, 0)),
                pl.BlockSpec((1, latent, 1), lambda i, j: (0, 0, 0)),
            ],
            out_specs=pl.BlockSpec((tn, latent, tl), lambda i, j: (i, 0, j)),
        ),
        compiler_params=cparams,
        cost_estimate=cost,
    )(x2d, w3, b3)


# ---------------------------------------------------------------------------
# Self-test
# ---------------------------------------------------------------------------

def _reference(z, weight, bias):
    latent = weight.shape[0]
    return jnp.tanh(weight.reshape(1, latent, 1) * z + bias.reshape(1, latent, 1))


if __name__ == "__main__":
    LATENT = 16
    key = jax.random.PRNGKey(0)
    k1, k2, k3, kw, kb = jax.random.split(key, 5)

    # Conv1d(1, LATENT, 1) params: weight (LATENT, 1, 1), bias (LATENT,).
    weight = jax.random.uniform(kw, (LATENT, 1, 1), jnp.float32, -1.0, 1.0)
    bias = jax.random.uniform(kb, (LATENT,), jnp.float32, -1.0, 1.0)

    # Case 1: lane-aligned L, tiny batch -> flattened path, grid split into
    # >= 2 channel-group tiles (v7x megacore), no padding anywhere.
    z1 = jax.random.normal(k1, (2, 1, 128), dtype=jnp.float32)
    o1 = jax.block_until_ready(encoder_forward(z1, weight, bias))
    assert o1.shape == (2, LATENT, 128)
    assert jnp.allclose(o1, _reference(z1, weight, bias), atol=1e-5, rtol=1e-5)

    # Case 2: unaligned L -> 3-D path with exact-size (masked) stores,
    # no pad + post-slice round trip.
    z2 = jax.random.normal(k2, (3, 1, 100), dtype=jnp.float32)
    o2 = jax.block_until_ready(encoder_forward(z2, weight, bias))
    assert o2.shape == (3, LATENT, 100)
    assert jnp.allclose(o2, _reference(z2, weight, bias), atol=1e-5, rtol=1e-5)

    # Case 3: batch not a multiple of the 8-row tile -> ragged batch edge
    # handled by Pallas masking (flattened path).
    z3 = jax.random.normal(k3, (10, 1, 256), dtype=jnp.float32)
    o3 = jax.block_until_ready(encoder_forward(z3, weight, bias))
    assert o3.shape == (10, LATENT, 256)
    assert jnp.allclose(o3, _reference(z3, weight, bias), atol=1e-5, rtol=1e-5)

    print("KERNEL_OK")
</pallas_src>

<mosaic_0001>
module attributes {stable_mosaic.version = 11 : i64} {
  func.func @_encoder_kernel_flat(%arg0: i32, %arg1: i32, %arg2: memref<2x128xf32, #tpu.memory_space<vmem>>, %arg3: memref<1x1x8xf32, #tpu.memory_space<vmem>>, %arg4: memref<1x1x8xf32, #tpu.memory_space<vmem>>, %arg5: memref<2x1024xf32, #tpu.memory_space<vmem>>) attributes {dimension_semantics = [#tpu.dimension_semantics<parallel>, #tpu.dimension_semantics<parallel>], iteration_bounds = array<i64: 1, 2>, scalar_prefetch = 0 : i64, scratch_operands = 0 : i64, tpu.core_type = #tpu.core_type<tc>, window_params = [{transform_indices = @transform_0, window_bounds = array<i64: 2, 128>}, {transform_indices = @transform_1, window_bounds = array<i64: 1, 1, 8>}, {transform_indices = @transform_2, window_bounds = array<i64: 1, 1, 8>}, {transform_indices = @transform_3, window_bounds = array<i64: 2, 1024>}]} {
    %c0 = arith.constant 0 : index
    %c0_0 = arith.constant 0 : index
    %0 = vector.load %arg2[%c0, %c0_0] : memref<2x128xf32, #tpu.memory_space<vmem>>, vector<2x128xf32>
    %c0_1 = arith.constant 0 : index
    %c0_2 = arith.constant 0 : index
    %c0_3 = arith.constant 0 : index
    %1 = vector.load %arg3[%c0_1, %c0_2, %c0_3] : memref<1x1x8xf32, #tpu.memory_space<vmem>>, vector<1x1x8xf32>
    %c0_4 = arith.constant 0 : index
    %c0_5 = arith.constant 0 : index
    %c0_6 = arith.constant 0 : index
    %2 = vector.load %arg4[%c0_4, %c0_5, %c0_6] : memref<1x1x8xf32, #tpu.memory_space<vmem>>, vector<1x1x8xf32>
    %3 = vector.extract_strided_slice %1 {offsets = [0, 0, 0], sizes = [1, 1, 1], strides = [1, 1, 1]} : vector<1x1x8xf32> to vector<1x1x1xf32>
    %4 = vector.shape_cast %3 : vector<1x1x1xf32> to vector<1x1xf32>
    %5 = vector.extract_strided_slice %2 {offsets = [0, 0, 0], sizes = [1, 1, 1], strides = [1, 1, 1]} : vector<1x1x8xf32> to vector<1x1x1xf32>
    %6 = vector.shape_cast %5 : vector<1x1x1xf32> to vector<1x1xf32>
    %7 = vector.broadcast %4 : vector<1x1xf32> to vector<2x128xf32>
    %8 = arith.mulf %0, %7 : vector<2x128xf32>
    %9 = vector.broadcast %6 : vector<1x1xf32> to vector<2x128xf32>
    %10 = arith.addf %8, %9 : vector<2x128xf32>
    %11 = math.tanh %10 : vector<2x128xf32>
    %c0_7 = arith.constant 0 : index
    %c0_8 = arith.constant 0 : index
    %12 = vector.load %arg5[%c0_7, %c0_8] : memref<2x1024xf32, #tpu.memory_space<vmem>>, vector<2x128xf32>
    tpu.vector_store %arg5[%c0_7, %c0_8], %11 {strides = array<i32>} : memref<2x1024xf32, #tpu.memory_space<vmem>>, vector<2x128xf32>,
    %13 = vector.extract_strided_slice %1 {offsets = [0, 0, 1], sizes = [1, 1, 1], strides = [1, 1, 1]} : vector<1x1x8xf32> to vector<1x1x1xf32>
    %14 = vector.shape_cast %13 : vector<1x1x1xf32> to vector<1x1xf32>
    %15 = vector.extract_strided_slice %2 {offsets = [0, 0, 1], sizes = [1, 1, 1], strides = [1, 1, 1]} : vector<1x1x8xf32> to vector<1x1x1xf32>
    %16 = vector.shape_cast %15 : vector<1x1x1xf32> to vector<1x1xf32>
    %17 = vector.broadcast %14 : vector<1x1xf32> to vector<2x128xf32>
    %18 = arith.mulf %0, %17 : vector<2x128xf32>
    %19 = vector.broadcast %16 : vector<1x1xf32> to vector<2x128xf32>
    %20 = arith.addf %18, %19 : vector<2x128xf32>
    %21 = math.tanh %20 : vector<2x128xf32>
    %c0_9 = arith.constant 0 : index
    %c128 = arith.constant 128 : index
    %22 = vector.load %arg5[%c0_9, %c128] : memref<2x1024xf32, #tpu.memory_space<vmem>>, vector<2x128xf32>
    tpu.vector_store %arg5[%c0_9, %c128], %21 {strides = array<i32>} : memref<2x1024xf32, #tpu.memory_space<vmem>>, vector<2x128xf32>,
    %23 = vector.extract_strided_slice %1 {offsets = [0, 0, 2], sizes = [1, 1, 1], strides = [1, 1, 1]} : vector<1x1x8xf32> to vector<1x1x1xf32>
    %24 = vector.shape_cast %23 : vector<1x1x1xf32> to vector<1x1xf32>
    %25 = vector.extract_strided_slice %2 {offsets = [0, 0, 2], sizes = [1, 1, 1], strides = [1, 1, 1]} : vector<1x1x8xf32> to vector<1x1x1xf32>
    %26 = vector.shape_cast %25 : vector<1x1x1xf32> to vector<1x1xf32>
    %27 = vector.broadcast %24 : vector<1x1xf32> to vector<2x128xf32>
    %28 = arith.mulf %0, %27 : vector<2x128xf32>
    %29 = vector.broadcast %26 : vector<1x1xf32> to vector<2x128xf32>
    %30 = arith.addf %28, %29 : vector<2x128xf32>
    %31 = math.tanh %30 : vector<2x128xf32>
    %c0_10 = arith.constant 0 : index
    %c256 = arith.constant 256 : index
    %32 = vector.load %arg5[%c0_10, %c256] : memref<2x1024xf32, #tpu.memory_space<vmem>>, vector<2x128xf32>
    tpu.vector_store %arg5[%c0_10, %c256], %31 {strides = array<i32>} : memref<2x1024xf32, #tpu.memory_space<vmem>>, vector<2x128xf32>,
    %33 = vector.extract_strided_slice %1 {offsets = [0, 0, 3], sizes = [1, 1, 1], strides = [1, 1, 1]} : vector<1x1x8xf32> to vector<1x1x1xf32>
    %34 = vector.shape_cast %33 : vector<1x1x1xf32> to vector<1x1xf32>
    %35 = vector.extract_strided_slice %2 {offsets = [0, 0, 3], sizes = [1, 1, 1], strides = [1, 1, 1]} : vector<1x1x8xf32> to vector<1x1x1xf32>
    %36 = vector.shape_cast %35 : vector<1x1x1xf32> to vector<1x1xf32>
    %37 = vector.broadcast %34 : vector<1x1xf32> to vector<2x128xf32>
    %38 = arith.mulf %0, %37 : vector<2x128xf32>
    %39 = vector.broadcast %36 : vector<1x1xf32> to vector<2x128xf32>
    %40 = arith.addf %38, %39 : vector<2x128xf32>
    %41 = math.tanh %40 : vector<2x128xf32>
    %c0_11 = arith.constant 0 : index
    %c384 = arith.constant 384 : index
    %42 = vector.load %arg5[%c0_11, %c384] : memref<2x1024xf32, #tpu.memory_space<vmem>>, vector<2x128xf32>
    tpu.vector_store %arg5[%c0_11, %c384], %41 {strides = array<i32>} : memref<2x1024xf32, #tpu.memory_space<vmem>>, vector<2x128xf32>,
    %43 = vector.extract_strided_slice %1 {offsets = [0, 0, 4], sizes = [1, 1, 1], strides = [1, 1, 1]} : vector<1x1x8xf32> to vector<1x1x1xf32>
    %44 = vector.shape_cast %43 : vector<1x1x1xf32> to vector<1x1xf32>
    %45 = vector.extract_strided_slice %2 {offsets = [0, 0, 4], sizes = [1, 1, 1], strides = [1, 1, 1]} : vector<1x1x8xf32> to vector<1x1x1xf32>
    %46 = vector.shape_cast %45 : vector<1x1x1xf32> to vector<1x1xf32>
    %47 = vector.broadcast %44 : vector<1x1xf32> to vector<2x128xf32>
    %48 = arith.mulf %0, %47 : vector<2x128xf32>
    %49 = vector.broadcast %46 : vector<1x1xf32> to vector<2x128xf32>
    %50 = arith.addf %48, %49 : vector<2x128xf32>
    %51 = math.tanh %50 : vector<2x128xf32>
    %c0_12 = arith.constant 0 : index
    %c512 = arith.constant 512 : index
    %52 = vector.load %arg5[%c0_12, %c512] : memref<2x1024xf32, #tpu.memory_space<vmem>>, vector<2x128xf32>
    tpu.vector_store %arg5[%c0_12, %c512], %51 {strides = array<i32>} : memref<2x1024xf32, #tpu.memory_space<vmem>>, vector<2x128xf32>,
    %53 = vector.extract_strided_slice %1 {offsets = [0, 0, 5], sizes = [1, 1, 1], strides = [1, 1, 1]} : vector<1x1x8xf32> to vector<1x1x1xf32>
    %54 = vector.shape_cast %53 : vector<1x1x1xf32> to vector<1x1xf32>
    %55 = vector.extract_strided_slice %2 {offsets = [0, 0, 5], sizes = [1, 1, 1], strides = [1, 1, 1]} : vector<1x1x8xf32> to vector<1x1x1xf32>
    %56 = vector.shape_cast %55 : vector<1x1x1xf32> to vector<1x1xf32>
    %57 = vector.broadcast %54 : vector<1x1xf32> to vector<2x128xf32>
    %58 = arith.mulf %0, %57 : vector<2x128xf32>
    %59 = vector.broadcast %56 : vector<1x1xf32> to vector<2x128xf32>
    %60 = arith.addf %58, %59 : vector<2x128xf32>
    %61 = math.tanh %60 : vector<2x128xf32>
    %c0_13 = arith.constant 0 : index
    %c640 = arith.constant 640 : index
    %62 = vector.load %arg5[%c0_13, %c640] : memref<2x1024xf32, #tpu.memory_space<vmem>>, vector<2x128xf32>
    tpu.vector_store %arg5[%c0_13, %c640], %61 {strides = array<i32>} : memref<2x1024xf32, #tpu.memory_space<vmem>>, vector<2x128xf32>,
    %63 = vector.extract_strided_slice %1 {offsets = [0, 0, 6], sizes = [1, 1, 1], strides = [1, 1, 1]} : vector<1x1x8xf32> to vector<1x1x1xf32>
    %64 = vector.shape_cast %63 : vector<1x1x1xf32> to vector<1x1xf32>
    %65 = vector.extract_strided_slice %2 {offsets = [0, 0, 6], sizes = [1, 1, 1], strides = [1, 1, 1]} : vector<1x1x8xf32> to vector<1x1x1xf32>
    %66 = vector.shape_cast %65 : vector<1x1x1xf32> to vector<1x1xf32>
    %67 = vector.broadcast %64 : vector<1x1xf32> to vector<2x128xf32>
    %68 = arith.mulf %0, %67 : vector<2x128xf32>
    %69 = vector.broadcast %66 : vector<1x1xf32> to vector<2x128xf32>
    %70 = arith.addf %68, %69 : vector<2x128xf32>
    %71 = math.tanh %70 : vector<2x128xf32>
    %c0_14 = arith.constant 0 : index
    %c768 = arith.constant 768 : index
    %72 = vector.load %arg5[%c0_14, %c768] : memref<2x1024xf32, #tpu.memory_space<vmem>>, vector<2x128xf32>
    tpu.vector_store %arg5[%c0_14, %c768], %71 {strides = array<i32>} : memref<2x1024xf32, #tpu.memory_space<vmem>>, vector<2x128xf32>,
    %73 = vector.extract_strided_slice %1 {offsets = [0, 0, 7], sizes = [1, 1, 1], strides = [1, 1, 1]} : vector<1x1x8xf32> to vector<1x1x1xf32>
    %74 = vector.shape_cast %73 : vector<1x1x1xf32> to vector<1x1xf32>
    %75 = vector.extract_strided_slice %2 {offsets = [0, 0, 7], sizes = [1, 1, 1], strides = [1, 1, 1]} : vector<1x1x8xf32> to vector<1x1x1xf32>
    %76 = vector.shape_cast %75 : vector<1x1x1xf32> to vector<1x1xf32>
    %77 = vector.broadcast %74 : vector<1x1xf32> to vector<2x128xf32>
    %78 = arith.mulf %0, %77 : vector<2x128xf32>
    %79 = vector.broadcast %76 : vector<1x1xf32> to vector<2x128xf32>
    %80 = arith.addf %78, %79 : vector<2x128xf32>
    %81 = math.tanh %80 : vector<2x128xf32>
    %c0_15 = arith.constant 0 : index
    %c896 = arith.constant 896 : index
    %82 = vector.load %arg5[%c0_15, %c896] : memref<2x1024xf32, #tpu.memory_space<vmem>>, vector<2x128xf32>
    tpu.vector_store %arg5[%c0_15, %c896], %81 {strides = array<i32>} : memref<2x1024xf32, #tpu.memory_space<vmem>>, vector<2x128xf32>,
    return
  }
  func.func @transform_0(%arg0: i32, %arg1: i32) -> (i32, i32) {
    %c0_i32 = arith.constant 0 : i32
    %c0_i32_0 = arith.constant 0 : i32
    return %arg0, %c0_i32 : i32, i32
  }
  func.func @transform_1(%arg0: i32, %arg1: i32) -> (i32, i32, i32) {
    %c0_i32 = arith.constant 0 : i32
    %c0_i32_0 = arith.constant 0 : i32
    %c0_i32_1 = arith.constant 0 : i32
    return %arg1, %c0_i32, %c0_i32_0 : i32, i32, i32
  }
  func.func @transform_2(%arg0: i32, %arg1: i32) -> (i32, i32, i32) {
    %c0_i32 = arith.constant 0 : i32
    %c0_i32_0 = arith.constant 0 : i32
    %c0_i32_1 = arith.constant 0 : i32
    return %arg1, %c0_i32, %c0_i32_0 : i32, i32, i32
  }
  func.func @transform_3(%arg0: i32, %arg1: i32) -> (i32, i32) {
    %c0_i32 = arith.constant 0 : i32
    return %arg0, %arg1 : i32, i32
  }
}

</mosaic_0001>

<bundles_post_ra>
// kernel: tpu_custom_call.1
= control target key start
LH: loop header
LB: loop body
LE: loop exit
PB: predicated region body
PF: predicated region fallthrough
CT: control target
= control target key end

     0   :  { %8 = vsyncpa [#allocation3], 0  ;;  %s944_s0 = inlined_call_operand.hbm [shape: f32[2,128], index: 0, kind: input, shape index: {}]   ;;  %s945_s1 = inlined_call_operand.hbm [shape: f32[2,1,8], index: 1, kind: input, shape index: {}]   ;;  %s946_s2 = inlined_call_operand.vmem [shape: f32[2,1,8], index: 2, kind: input, shape index: {}]   ;;  %s947_s3 = inlined_call_operand.hbm [shape: f32[2,2048], index: 3, kind: output, shape index: {}]  }
   0x1   :  { %9 = vsyncpa [#allocation6], 0 }
   0x2   :  { %11 = vsyncpa [#allocation6 + $0x1], 0 }
   0x3   :  { %12 = vsyncpa [#allocation4], 0 }
   0x4   :  { %14 = vsyncpa [#allocation4 + $0x1], 0  ;;  %s760_s12 = smov 0   ;;  %s762_s13 = smov 0  }
   0x5   :  { %s764_s14 = smov 0   ;;  %s766_s15 = smov 0  }
   0x6   :  { %s768_s16 = smov 0   ;;  %s770_s17 = smov 0  }
   0x7 LB: > { %s459_s18 = sadd.s32 4294967295, %s727_s17   ;;  %s460_s19 = sadd.s32 4294967294, %s727_s17   ;;  %s727_s17 = sphi %s770_s17, %s20_s17   ;;  %s723_s16 = sphi %s768_s16, %s964_s16   ;;  %s719_s15 = sphi %s766_s15, %s963_s15   ;;  %s715_s14 = sphi %s764_s14, %s962_s14   ;;  %s711_s13 = sphi %s762_s13, %s961_s13   ;;  %s707_s12 = sphi %s760_s12, %s960_s12  }
   0x8   : > { %p78_p0 = scmp.ne.s32.totalorder %s711_s13, %s707_s12  ;;  %p794_p1 = scmp.eq.s32.totalorder %s459_s18, 0 }
   0x9   : > { %p798_p2 = scmp.eq.s32.totalorder %s459_s18, 1  ;;  %p136_p3 = scmp.eq.s32.totalorder %s460_s19, 1 }
   0xa   : > { %p804_p4 = por %p794_p1, %p78_p0  ;;  %p461_p5 = scmp.ge.s32.totalorder %s727_s17, 1 }
   0xb   : > { %p809_p6 = por %p136_p3, %p78_p0  ;;  %p143_p7 = scmp.lt.s32.totalorder %s727_s17, 3 }
   0xc   : > { %s951_s22 = scalar_select %p804_p4, 1, 0 }
   0xd   : > { %s952_s23 = scalar_select %p809_p6, 1, 0 }
   0xe   : > { %p814_p8 = pnand %p461_p5, %p143_p7  ;;  %s729_s25 = smov [#allocation2]  }
   0xf   : > { %s158_s26 = sshll.u32 %s729_s25, 4  ;;  %s29_s28 = sadd.s32 1, %s723_s16  ;;  %s159_s26 = int_to_ptr.vmem [resolvable:$true] %s158_s26 }
  0x10   : > { %p484_p10 = pneg %p814_p8  ;;  %s65_s29 = sadd.s32 1, %s715_s14 }
  0x11   : > { %p30_p12 = scmp.ge.s32.totalorder %s29_s28, 2  ;;  %s600_s30 = scalar_lea.vmem %s159_s26, 32 }
  0x12   : > { %p823_p11 = pnand %p484_p10, %p794_p1  ;;  %p601_p0 = scmp.ne.s32.totalorder %s159_s26, %s600_s30 }
  0x13   : > { %p608_p7 = scmp.lt.s32.totalorder %s159_s26, %s159_s26  ;;  %p609_p6 = scmp.lt.s32.totalorder %s600_s30, %s600_s30 }
  0x14   : > { %p591_p13 = pneg %p823_p11 }
  0x15   : > { %p610_p9 = por %p609_p6, %p608_p7 }
  0x16   : > { %p603_p3 = pnand %p601_p0, %p591_p13 }
  0x18   : > { %p604_p5 = pneg %p603_p3 }
  0x1a   : > { %p611_p4 = pnand %p610_p9, %p604_p5 }
  0x1c   : > { %614 = shalt.err (!%p611_p4)
}
  0x1d   : > { %487 = dma.hbm_to_vmem [thread:$0]  (!%p823_p11), %s944_s0, 32, %s159_s26, [#allocation3]  }
  0x1e   : > { %s966_s28 = smov (%p30_p12, %s29_s28), 0  ;;  %p72_p6 = scmp.ne.s32.totalorder %s715_s14, %s711_s13 }
  0x1f   : > { %p73_p4 = scmp.eq.s32.totalorder %s727_s17, 0  ;;  %s62_s6 = ssub.s32 %s723_s16, %s966_s28 }
  0x20   : > { %p497_p9 = scmp.lt.s32.totalorder %s727_s17, 2  ;;  %p63_p10 = scmp.eq.s32.totalorder %s62_s6, 0 }
  0x21   : > { %p74_p13 = por %p73_p4, %p72_p6  ;;  %p846_p0 = por %p798_p2, %p72_p6 }
  0x22   : > { %s169_s8 = sand.u32 1, %s715_s14   ;;  %s464_s10 = sshll.u32 %s723_s16, 4 }
  0x23   : > { %s852_s9 = scalar_select %p63_p10, %s715_s14, %s65_s29  }
  0x24   : > { %s172_s11 = scalar_lea.vmem [#allocation5], %s169_s8  ;;  %s177_s26 = scalar_lea.hbm %s945_s1, %s464_s10 }
  0x25   : > { %s179_s18 = sshll.u32 %s172_s11, 4  ;;  %p858_p11 = pnand %p497_p9, %p74_p13  ;;  %s180_s18 = int_to_ptr.vmem [resolvable:$true] %s179_s18 }
  0x26   : > { %s170_s21 = scalar_lea.sflag [#allocation6], %s169_s8  ;;  %s628_s30 = scalar_lea.vmem %s180_s18, 16 }
  0x27   : > { %p617_p2 = pneg %p858_p11  ;;  %p629_p12 = scmp.ne.s32.totalorder %s180_s18, %s628_s30 }
  0x28   : > { %s730_s29 = smov [#allocation5]  }
  0x29   : > { %p631_p3 = pnand %p629_p12, %p617_p2  ;;  %s633_s4 = sshll.u32 %s730_s29, 4  ;;  %s634_s4 = int_to_ptr.vmem [resolvable:$false] %s633_s4 }
  0x2a   : > { %s635_s5 = scalar_lea.vmem %s634_s4, 32  ;;  %p636_p7 = scmp.lt.s32.totalorder %s180_s18, %s634_s4 }
  0x2b   : > { %p632_p5 = pneg %p631_p3  ;;  %p637_p6 = scmp.lt.s32.totalorder %s635_s5, %s628_s30 }
  0x2d   : > { %p638_p4 = por %p637_p6, %p636_p7 }
  0x2f   : > { %p639_p10 = pnand %p638_p4, %p632_p5 }
  0x31   : > { %642 = shalt.err (!%p639_p10)
}
  0x32   : > { %491 = dma.hbm_to_vmem [thread:$0]  (!%p858_p11), %s177_s26, 16, %s180_s18, %s170_s21  }
  0x33   : > { %194 = sbr.rel (%p814_p8) target bundleno = 260 (0x104), region = 32 }
  0x38   : > { %694 = dma.done.wait (%p794_p1), [#allocation3], 32  }
  0x39   : > { %696 = vsyncadd (%p794_p1), [#allocation3], 4294967264  ;;  %s873_s6 = sand.u32 1, %s711_s13   ;;  %p957_p9 = scmp.ne.s32.totalorder %s951_s22, 0 }
  0x3a   : > { %s201_s8 = scalar_lea.sflag [#allocation6], %s873_s6  ;;  %s203_s10 = scalar_lea.vmem [#allocation5], %s873_s6 }
  0x3b   : > { %698 = dma.done.wait (%p957_p9), %s201_s8, 16  }
  0x3c   : > { %700 = vsyncadd (%p957_p9), %s201_s8, 4294967280  ;;  %v731_v0 = vmov 2   ;;  %v732_v1 = vmov 1   ;;  %v468_v2 = vld [vmem:[%s203_s10] ss:$0 sm:$0xff]  ;;  %p228_p1 = scmp.lt.s32.totalorder %s719_s15, 1 }
  0x3d   : > { %558 = vset.pattern.permute.xlu1 %v731_v0  ;;  %557 = vset.pattern.permute.xlu0 %v732_v1  ;;  %v733_v3 = vmov 3   ;;  %v734_v4 = vmov 5   ;;  %v735_v5 = vmov 4   ;;  %v736_v6 = vmov 0   ;;  %v232_v14 = vld [vmem:[#allocation2] sm:$0x3] }
  0x3e   : > { %270 = vperm.xlu1 %558, %v468_v2   ;;  %258 = vperm.xlu0 %557, %v468_v2   ;;  %s229_s20 = scalar_select %p228_p1, %s719_s15, 1  ;;  %v737_v8 = vmov 6   ;;  %v738_v9 = vmov 7  }
  0x3f   : > { %s467_s18 = sshll.u32 %s873_s6, 4  ;;  %s475_s25 = sshll.u32 %s719_s15, 8 }
  0x40   : > { %s230_s11 = scalar_lea.vmem %s946_s2, %s229_s20  ;;  %s887_s19 = scalar_lea.vmem [#allocation7], %s467_s18 }
  0x41   : > { %v469_v7 = vld [vmem:[%s230_s11] ss:$0 sm:$0xff]  ;;  %s358_s26 = sshll.u32 %s887_s19, 4  ;;  %s901_s30 = scalar_lea.hbm %s947_s3, %s475_s25  ;;  %s359_s26 = int_to_ptr.vmem [resolvable:$true] %s358_s26 }
  0x42   : > { %559 = vset.pattern.permute.xlu1 %v733_v3  ;;  %561 = vset.pattern.permute.xlu0 %v734_v4  ;;  %s342_s29 = scalar_lea.sflag [#allocation4], %s873_s6  ;;  %s643_s4 = scalar_lea.vmem %s359_s26, 256 }
  0x43   : > { %282 = vperm.xlu1 %559, %v468_v2   ;;  %306 = vperm.xlu0 %561, %v468_v2   ;;  %p644_p8 = scmp.ne.s32.totalorder %s359_s26, %s643_s4  ;;  %s739_s5 = smov [#allocation7]  }
  0x44   : > { %s647_s8 = sshll.u32 %s739_s5, 4  ;;  %s648_s8 = int_to_ptr.vmem [resolvable:$false] %s647_s8 }
  0x45   : > { %p645_p13 = pnand %p644_p8, %p846_p0  ;;  %s649_s10 = scalar_lea.vmem %s648_s8, 512 }
  0x46   : > { %p650_p2 = scmp.lt.s32.totalorder %s359_s26, %s648_s8  ;;  %p651_p12 = scmp.lt.s32.totalorder %s649_s10, %s643_s4 }
  0x47   : > { %560 = vset.pattern.permute.xlu1 %v735_v5  ;;  %562 = vset.pattern.permute.xlu0 %v736_v6  ;;  %p646_p11 = pneg %p645_p13 }
  0x48   : > { %294 = vperm.xlu1 %560, %v468_v2   ;;  %241 = vperm.xlu0 %562, %v468_v2   ;;  %p652_p3 = por %p651_p12, %p650_p2 }
  0x4a   : > { %p653_p5 = pnand %p652_p3, %p646_p11 }
  0x4c   : > { %563 = vset.pattern.permute.xlu1 %v737_v8  ;;  %251 = vperm.xlu0 %562, %v469_v7  }
  0x4d   : > { %318 = vperm.xlu1 %563, %v468_v2  }
  0x50   : > { %567 = vset.pattern.permute.xlu0 %v733_v3 }
  0x51   : > { %564 = vset.pattern.permute.xlu1 %v738_v9  ;;  %287 = vperm.xlu0 %567, %v469_v7  }
  0x52   : > { %330 = vperm.xlu1 %564, %v468_v2  }
  0x55   : > { %570 = vset.pattern.permute.xlu0 %v737_v8 }
  0x56   : > { %565 = vset.pattern.permute.xlu1 %v732_v1  ;;  %323 = vperm.xlu0 %570, %v469_v7  }
  0x57   : > { %263 = vperm.xlu1 %565, %v469_v7  }
  0x5a   : > { %572 = vset.pattern.permute.xlu0 %v738_v9 }
  0x5b   : > { %566 = vset.pattern.permute.xlu1 %v731_v0 }
  0x5c   : > { %275 = vperm.xlu1 %566, %v469_v7  }
  0x60   : > { %568 = vset.pattern.permute.xlu1 %v735_v5 }
  0x61   : > { %299 = vperm.xlu1 %568, %v469_v7  }
  0x65   : > { %569 = vset.pattern.permute.xlu1 %v734_v4 }
  0x66   : > { %311 = vperm.xlu1 %569, %v469_v7  }
  0x6a   : > { %571 = vset.pattern.permute.xlu1 %v738_v9 }
  0x6b   : > { %335 = vperm.xlu1 %571, %v469_v7  }
  0xb9   : > { %v271_v10 = vpop.permute.xlu1 %270  ;;  %v259_v11 = vpop.permute.xlu0 %258 }
  0xba   : > { %v261_v26 = vmul.f32 %v259_v11, %v232_v14  ;;  %v273_v31 = vmul.f32 %v271_v10, %v232_v14 }
  0xbe   : > { %v283_v12 = vpop.permute.xlu1 %282  ;;  %v307_v13 = vpop.permute.xlu0 %306 }
  0xbf   : > { %v285_v21 = vmul.f32 %v283_v12, %v232_v14  ;;  %v309_v39 = vmul.f32 %v307_v13, %v232_v14 }
  0xc3   : > { %v295_v15 = vpop.permute.xlu1 %294  ;;  %v242_v16 = vpop.permute.xlu0 %241 }
  0xc4   : > { %v244_v17 = vmul.f32 %v242_v16, %v232_v14  ;;  %v297_v35 = vmul.f32 %v295_v15, %v232_v14 }
  0xc7   : > { %v252_v18 = vpop.permute.xlu0 %251 }
  0xc8   : > { %v319_v19 = vpop.permute.xlu1 %318  ;;  %v254_v20 = vadd.f32 %v252_v18, %v244_v17 }
  0xc9   : > { %v321_v25 = vmul.f32 %v319_v19, %v232_v14 }
  0xca   : > { %573 = vtanh.f32 %v254_v20 }
  0xcc   : > { %v288_v22 = vpop.permute.xlu0 %287 }
  0xcd   : > { %v290_v23 = vadd.f32 %v288_v22, %v285_v21  ;;  %v331_v24 = vpop.permute.xlu1 %330 }
  0xce   : > { %v333_v44 = vmul.f32 %v331_v24, %v232_v14 }
  0xcf   : > { %575 = vtanh.f32 %v290_v23 }
  0xd1   : > { %v324_v27 = vpop.permute.xlu0 %323 }
  0xd2   : > { %v326_v28 = vadd.f32 %v324_v27, %v321_v25  ;;  %v264_v29 = vpop.permute.xlu1 %263 }
  0xd3   : > { %v266_v30 = vadd.f32 %v264_v29, %v261_v26 }
  0xd4   : > { %577 = vtanh.f32 %v326_v28 }
  0xd5   : > { %579 = vtanh.f32 %v266_v30 }
  0xd7   : > { %v574_v32 = vpop.eup %573  ;;  %v276_v33 = vpop.permute.xlu1 %275 }
  0xd8   : > { %256 = vst [vmem:[%s887_s19] sm:$0x3] %v574_v32  ;;  %v278_v34 = vadd.f32 %v276_v33, %v273_v31 }
  0xda   : > { %581 = vtanh.f32 %v278_v34 }
  0xdc   : > { %v576_v36 = vpop.eup %575  ;;  %v300_v37 = vpop.permute.xlu1 %299 }
  0xdd   : > { %292 = vst [vmem:[%s887_s19 + $0x6] sm:$0x3] %v576_v36  ;;  %v302_v38 = vadd.f32 %v300_v37, %v297_v35 }
  0xdf   : > { %583 = vtanh.f32 %v302_v38 }
  0xe1   : > { %v578_v40 = vpop.eup %577  ;;  %v312_v41 = vpop.permute.xlu1 %311 }
  0xe2   : > { %v580_v42 = vpop.eup %579  ;;  %328 = vst [vmem:[%s887_s19 + $0xc] sm:$0x3] %v578_v40  ;;  %v314_v43 = vadd.f32 %v312_v41, %v309_v39 }
  0xe3   : > { %268 = vst [vmem:[%s887_s19 + $0x2] sm:$0x3] %v580_v42 }
  0xe4   : > { %585 = vtanh.f32 %v314_v43 }
  0xe6   : > { %v336_v45 = vpop.permute.xlu1 %335 }
  0xe7   : > { %v582_v46 = vpop.eup %581  ;;  %v338_v47 = vadd.f32 %v336_v45, %v333_v44 }
  0xe8   : > { %280 = vst [vmem:[%s887_s19 + $0x4] sm:$0x3] %v582_v46 }
  0xe9   : > { %587 = vtanh.f32 %v338_v47 }
  0xec   : > { %v584_v48 = vpop.eup %583 }
  0xed   : > { %304 = vst [vmem:[%s887_s19 + $0x8] sm:$0x3] %v584_v48 }
  0xf1   : > { %v586_v49 = vpop.eup %585 }
  0xf2   : > { %316 = vst [vmem:[%s887_s19 + $0xa] sm:$0x3] %v586_v49 }
  0xf6   : > { %v588_v50 = vpop.eup %587 }
  0xf7   : > { %340 = vst [vmem:[%s887_s19 + $0xe] sm:$0x3] %v588_v50 }
  0xf8   : > { %656 = shalt.err (!%p653_p5)
}
  0xf9   : > { %s657_s15 = scalar_lea.hbm %s901_s30, 256  ;;  %s661_s24 = scalar_lea.hbm %s947_s3, 512 }
  0xfa   : > { %p658_p7 = scmp.ne.s32.totalorder %s901_s30, %s657_s15  ;;  %p662_p10 = scmp.lt.s32.totalorder %s901_s30, %s947_s3 }
  0xfb   : > { %p663_p9 = scmp.lt.s32.totalorder %s661_s24, %s657_s15 }
  0xfc   : > { %p659_p6 = pnand %p658_p7, %p846_p0 }
  0xfd   : > { %p664_p1 = por %p663_p9, %p662_p10 }
  0xfe   : > { %p660_p4 = pneg %p659_p6 }
 0x100   : > { %p665_p8 = pnand %p664_p1, %p660_p4 }
 0x102   : > { %668 = shalt.err (!%p665_p8)
}
 0x103   : > { %482 = dma.vmem_to_hbm [thread:$0]  (%p846_p0), %s359_s26, 256, %s901_s30, %s342_s29  }
 0x104 PF: > { %s370_s18 = sand.u32 1, %s707_s12   ;;  %p958_p13 = scmp.ne.s32.totalorder %s952_s23, 0 }
 0x105   : > { %p959_p11 = scmp.ge.s32.totalorder %s727_s17, 2  ;;  %s371_s19 = scalar_lea.sflag [#allocation4], %s370_s18 }
 0x107   : > { %p493_p2 = pnand %p959_p11, %p958_p13 }
 0x109   : > { %p494_p12 = pneg %p493_p2 }
 0x10b   : > { %702 = dma.done.wait (%p494_p12), %s371_s19, 256  }
 0x10c   : > { %704 = vsyncadd (%p494_p12), %s371_s19, 4294967040  ;;  %s20_s17 = sadd.s32 1, %s727_s17   ;;  %s960_s12 = smov %s711_s13 }
 0x10d   : > { %p17_p3 = scmp.ge.s32.totalorder %s20_s17, 4   ;;  %s961_s13 = smov %s715_s14 }
 0x10e   : > { %s962_s14 = smov %s852_s9  ;;  %s963_s15 = smov %s723_s16 }
 0x10f   : > { %s964_s16 = smov %s966_s28  ;;  %19 = sbr.rel (!%p17_p3) target bundleno = 7 (0x7), region = 86 }
 0x114   :  { %376 = vsyncpa [#allocation3], 1 }
 0x115   :  { %378 = vsyncpa [#allocation3 + $0x1], 1 }
 0x116   :  { %379 = vsyncpa [#allocation6], 1 }
 0x117   :  { %381 = vsyncpa [#allocation6 + $0x1], 1 }
 0x118   :  { %382 = vsyncpa [#allocation4], 1 }
 0x119   :  { %384 = vsyncpa [#allocation4 + $0x1], 1 }

</bundles_post_ra>
